<compile_context>
chip_gen: v7x
topology: tpu7x:2x2x1
jax: 0.10.0
libtpu: 0.0.40
codegen_flags: <defaults>
</compile_context>

<pallas_src>
import jax
import jax.numpy as jnp
from jax.experimental import pallas as pl
from jax.experimental.pallas import tpu as pltpu

HIDDEN = 32    # hidden_size
BATCH = 1      # EncoderRNN.forward does embedded.view(1, 1, -1) -> batch is always 1
SEQLEN = 8     # timesteps fused into a single pallas_call in the sequence variant
LANES = 128    # padded gate width (3*HIDDEN=96 -> 128) for unmasked vregs


def _gru_fused_kernel(emb_ref, h0_ref, wih_ref, whh_ref, bi_ref, bh_ref,
                      out_ref, hT_ref):
    """Whole GRU sequence in one invocation (grid=(1,), everything resident).

    emb_ref : (T*B, H)   embedded sequence, flattened over time
    h0_ref  : (B, H)     initial hidden
    wih_ref : (H, 128)   W_ih^T, gate order (r, z, n) on lanes 0:96, zero-padded
    whh_ref : (H, 128)   W_hh^T, same layout
    bi_ref  : (1, 128)   [b_ih_r+b_hh_r, b_ih_z+b_hh_z, b_ih_n, 0-pad]
    bh_ref  : (1, 128)   [0, 0, b_hh_n, 0-pad]  (must stay inside the r*(...) term)
    out_ref : (T*B, H)   per-timestep hidden states (== GRU outputs)
    hT_ref  : (B, H)     final hidden state
    """
    B, H = h0_ref.shape
    T = emb_ref.shape[0] // B

    wih = wih_ref[...]                     # (H, 128)   hoisted loads
    whh = whh_ref[...]                     # (H, 128)
    bh = bh_ref[...]                       # (1, 128)

    # Prologue: input projections for ALL timesteps in one MXU push
    # (no dependence on the recurrence).
    gi_all = jnp.dot(emb_ref[...], wih,
                     preferred_element_type=jnp.float32) + bi_ref[...]   # (T*B, 128)

    h = h0_ref[...]                        # (B, H)
    for t in range(T):                     # static, fully unrolled (T is small)
        gi = gi_all[t * B:(t + 1) * B, :]                                # (B, 128)
        gh = jnp.dot(h, whh, preferred_element_type=jnp.float32) + bh    # (B, 128)

        # torch GRU gate order: r, z, n (lane offsets 0 / H / 2H)
        r = jax.nn.sigmoid(gi[:, 0:H] + gh[:, 0:H])
        z = jax.nn.sigmoid(gi[:, H:2 * H] + gh[:, H:2 * H])
        n = jnp.tanh(gi[:, 2 * H:3 * H] + r * gh[:, 2 * H:3 * H])
        h = (1.0 - z) * n + z * h                                        # (B, H)

        out_ref[t * B:(t + 1) * B, :] = h  # resident block; flushed once at end

    hT_ref[...] = h


def init_params(key, hidden_size=HIDDEN):
    """Deterministic synthetic GRU params in PyTorch (out_features, in_features) layout."""
    H = hidden_size
    ks = jax.random.split(key, 4)
    bound = 1.0 / jnp.sqrt(jnp.float32(H))

    def u(k, shape):
        return jax.random.uniform(k, shape, jnp.float32, -bound, bound)

    return dict(
        gru_w_ih=u(ks[0], (3 * H, H)),
        gru_w_hh=u(ks[1], (3 * H, H)),
        gru_b_ih=u(ks[2], (3 * H,)),
        gru_b_hh=u(ks[3], (3 * H,)),
    )


def prepare_params(params, lanes=LANES):
    """One-time weight re-layout + bias folding (hoisted OFF the per-step path)."""
    H = params["gru_w_ih"].shape[1]
    G = 3 * H
    pad = lanes - G

    wih = jnp.pad(params["gru_w_ih"].T.astype(jnp.float32), ((0, 0), (0, pad)))  # (H, 128)
    whh = jnp.pad(params["gru_w_hh"].T.astype(jnp.float32), ((0, 0), (0, pad)))  # (H, 128)

    b_ih = params["gru_b_ih"].astype(jnp.float32)
    b_hh = params["gru_b_hh"].astype(jnp.float32)
    # r/z gates: b_ih + b_hh folded together; n gate keeps b_ih_n here and
    # b_hh_n separately (it must be multiplied by r inside the kernel).
    bi = b_ih.at[:2 * H].add(b_hh[:2 * H])
    bi = jnp.pad(bi, (0, pad)).reshape(1, lanes)                                  # (1, 128)
    bh = jnp.pad(jnp.concatenate([jnp.zeros((2 * H,), jnp.float32), b_hh[2 * H:]]),
                 (0, pad)).reshape(1, lanes)                                      # (1, 128)
    return dict(wih=wih, whh=whh, bi=bi, bh=bh)


def gru_sequence(emb_seq, h0, prepped):
    """Run the whole T-step GRU in a single pallas_call (single grid step)."""
    T, B, H = emb_seq.shape
    L = prepped["wih"].shape[1]

    emb2d = emb_seq.reshape(T * B, H).astype(jnp.float32)
    h0_2d = h0.reshape(B, H).astype(jnp.float32)

    out2d, h_final = pl.pallas_call(
        _gru_fused_kernel,
        out_shape=(jax.ShapeDtypeStruct((T * B, H), jnp.float32),
                   jax.ShapeDtypeStruct((B, H), jnp.float32)),
        grid_spec=pltpu.PrefetchScalarGridSpec(
            num_scalar_prefetch=0,
            grid=(1,),                                       # everything resident
            in_specs=[
                pl.BlockSpec((T * B, H), lambda i: (0, 0)),  # full embedded sequence
                pl.BlockSpec((B, H), lambda i: (0, 0)),      # h0
                pl.BlockSpec((H, L), lambda i: (0, 0)),      # W_ih^T (padded)
                pl.BlockSpec((H, L), lambda i: (0, 0)),      # W_hh^T (padded)
                pl.BlockSpec((1, L), lambda i: (0, 0)),      # folded prologue bias
                pl.BlockSpec((1, L), lambda i: (0, 0)),      # b_hh_n bias
            ],
            out_specs=[
                pl.BlockSpec((T * B, H), lambda i: (0, 0)),  # all hidden states
                pl.BlockSpec((B, H), lambda i: (0, 0)),      # final hidden
            ],
        ),
        compiler_params=pltpu.CompilerParams(
            dimension_semantics=("arbitrary",)),             # recurrence is serial
        # TODO(synk): on v7x, independent sequences could be sharded across the two
        # TensorCores via a leading "parallel" batch axis; with a single sequence
        # (batch=1 per the module) there is nothing to parallelize.
    )(emb2d, h0_2d, prepped["wih"], prepped["whh"], prepped["bi"], prepped["bh"])

    return out2d.reshape(T, B, H), h_final


@jax.jit
def encoder_rnn_forward(embedded, hidden, prepped):
    """Exact EncoderRNN.forward: (output, hidden, embedded) for one timestep."""
    H = hidden.shape[-1]
    x = embedded.reshape(1, 1, H)                 # == embedded.view(1, 1, -1)
    out_seq, h_final = gru_sequence(x, hidden.reshape(1, H), prepped)
    return out_seq, h_final[None], embedded


@jax.jit
def encoder_rnn_sequence(emb_seq, hidden, prepped):
    """Fused multi-step encoder: all timesteps in one kernel launch."""
    T, B, H = emb_seq.shape
    out_seq, h_final = gru_sequence(emb_seq, hidden.reshape(B, H), prepped)
    return out_seq, h_final[None]


def reference_gru_step(x, h, params):
    """Pure-JAX mirror of torch.nn.GRU single step (gate order r, z, n)."""
    gi = x @ params["gru_w_ih"].T + params["gru_b_ih"]
    gh = h @ params["gru_w_hh"].T + params["gru_b_hh"]
    i_r, i_z, i_n = jnp.split(gi, 3, axis=-1)
    h_r, h_z, h_n = jnp.split(gh, 3, axis=-1)
    r = jax.nn.sigmoid(i_r + h_r)
    z = jax.nn.sigmoid(i_z + h_z)
    n = jnp.tanh(i_n + r * h_n)
    return (1.0 - z) * n + z * h


if __name__ == "__main__":
    key = jax.random.PRNGKey(0)
    k_emb, k_hid, k_seq, k_par = jax.random.split(key, 4)

    params = init_params(k_par)
    prepped = prepare_params(params)   # one-time re-layout, reused every call

    # --- single-step forward, exactly the module's semantics (seq=1, batch=1) ---
    embedded = jax.random.normal(k_emb, (1, 1, HIDDEN), jnp.float32)
    hidden = jax.random.normal(k_hid, (1, 1, HIDDEN), jnp.float32)

    out, h_new, emb_back = encoder_rnn_forward(embedded, hidden, prepped)
    jax.block_until_ready((out, h_new, emb_back))

    r_h = reference_gru_step(embedded.reshape(1, HIDDEN),
                             hidden.reshape(1, HIDDEN), params)
    assert out.shape == (1, 1, HIDDEN)
    assert h_new.shape == (1, 1, HIDDEN)
    assert jnp.allclose(out.reshape(1, HIDDEN), r_h, atol=1e-5, rtol=1e-5)
    assert jnp.allclose(h_new.reshape(1, HIDDEN), r_h, atol=1e-5, rtol=1e-5)
    assert jnp.array_equal(emb_back, embedded)

    # --- fused multi-step variant: whole encoder sequence in ONE pallas_call ---
    emb_seq = jax.random.normal(k_seq, (SEQLEN, BATCH, HIDDEN), jnp.float32)
    h0 = jnp.zeros((1, BATCH, HIDDEN), jnp.float32)   # EncoderRNN.initHidden()

    out_seq, h_last = encoder_rnn_sequence(emb_seq, h0, prepped)
    jax.block_until_ready((out_seq, h_last))

    h_ref = h0.reshape(BATCH, HIDDEN)
    ref_steps = []
    for t in range(SEQLEN):
        h_ref = reference_gru_step(emb_seq[t], h_ref, params)
        ref_steps.append(h_ref)
    ref_seq = jnp.stack(ref_steps)
    assert jnp.allclose(out_seq, ref_seq, atol=1e-5, rtol=1e-5)
    assert jnp.allclose(h_last.reshape(BATCH, HIDDEN), h_ref, atol=1e-5, rtol=1e-5)

    print("KERNEL_OK")
</pallas_src>

<mosaic_0001>
module attributes {stable_mosaic.version = 11 : i64} {
  func.func @_gru_fused_kernel(%arg0: i32, %arg1: memref<1x32xf32, #tpu.memory_space<vmem>>, %arg2: memref<1x32xf32, #tpu.memory_space<vmem>>, %arg3: memref<32x128xf32, #tpu.memory_space<vmem>>, %arg4: memref<32x128xf32, #tpu.memory_space<vmem>>, %arg5: memref<1x128xf32, #tpu.memory_space<vmem>>, %arg6: memref<1x128xf32, #tpu.memory_space<vmem>>, %arg7: memref<1x32xf32, #tpu.memory_space<vmem>>, %arg8: memref<1x32xf32, #tpu.memory_space<vmem>>) attributes {dimension_semantics = [#tpu.dimension_semantics<arbitrary>], iteration_bounds = array<i64: 1>, scalar_prefetch = 0 : i64, scratch_operands = 0 : i64, tpu.core_type = #tpu.core_type<tc>, window_params = [{pipeline_mode = #tpu.pipeline_mode<synchronous>, transform_indices = @transform_0, window_bounds = array<i64: 1, 32>}, {pipeline_mode = #tpu.pipeline_mode<synchronous>, transform_indices = @transform_1, window_bounds = array<i64: 1, 32>}, {pipeline_mode = #tpu.pipeline_mode<synchronous>, transform_indices = @transform_2, window_bounds = array<i64: 32, 128>}, {pipeline_mode = #tpu.pipeline_mode<synchronous>, transform_indices = @transform_3, window_bounds = array<i64: 32, 128>}, {pipeline_mode = #tpu.pipeline_mode<synchronous>, transform_indices = @transform_4, window_bounds = array<i64: 1, 128>}, {pipeline_mode = #tpu.pipeline_mode<synchronous>, transform_indices = @transform_5, window_bounds = array<i64: 1, 128>}, {pipeline_mode = #tpu.pipeline_mode<synchronous>, transform_indices = @transform_6, window_bounds = array<i64: 1, 32>}, {pipeline_mode = #tpu.pipeline_mode<synchronous>, transform_indices = @transform_7, window_bounds = array<i64: 1, 32>}]} {
    %c0 = arith.constant 0 : index
    %c0_0 = arith.constant 0 : index
    %0 = vector.load %arg3[%c0, %c0_0] : memref<32x128xf32, #tpu.memory_space<vmem>>, vector<32x128xf32>
    %c0_1 = arith.constant 0 : index
    %c0_2 = arith.constant 0 : index
    %1 = vector.load %arg4[%c0_1, %c0_2] : memref<32x128xf32, #tpu.memory_space<vmem>>, vector<32x128xf32>
    %c0_3 = arith.constant 0 : index
    %c0_4 = arith.constant 0 : index
    %2 = vector.load %arg6[%c0_3, %c0_4] : memref<1x128xf32, #tpu.memory_space<vmem>>, vector<1x128xf32>
    %c0_5 = arith.constant 0 : index
    %c0_6 = arith.constant 0 : index
    %3 = vector.load %arg1[%c0_5, %c0_6] : memref<1x32xf32, #tpu.memory_space<vmem>>, vector<1x32xf32>
    %cst = arith.constant dense<0.000000e+00> : vector<1x128xf32>
    %4 = tpu.matmul %3, %0, %cst {dimension_numbers = #tpu.dot_dimension_numbers<[1], [0], [0], [1], [0, 0, 1, 1], [], []>} : vector<1x32xf32>, vector<32x128xf32>, vector<1x128xf32> -> vector<1x128xf32>
    %c0_7 = arith.constant 0 : index
    %c0_8 = arith.constant 0 : index
    %5 = vector.load %arg5[%c0_7, %c0_8] : memref<1x128xf32, #tpu.memory_space<vmem>>, vector<1x128xf32>
    %6 = arith.addf %4, %5 : vector<1x128xf32>
    %c0_9 = arith.constant 0 : index
    %c0_10 = arith.constant 0 : index
    %7 = vector.load %arg2[%c0_9, %c0_10] : memref<1x32xf32, #tpu.memory_space<vmem>>, vector<1x32xf32>
    %cst_11 = arith.constant dense<0.000000e+00> : vector<1x128xf32>
    %8 = tpu.matmul %7, %1, %cst_11 {dimension_numbers = #tpu.dot_dimension_numbers<[1], [0], [0], [1], [0, 0, 1, 1], [], []>} : vector<1x32xf32>, vector<32x128xf32>, vector<1x128xf32> -> vector<1x128xf32>
    %9 = arith.addf %8, %2 : vector<1x128xf32>
    %10 = vector.extract_strided_slice %6 {offsets = [0, 0], sizes = [1, 32], strides = [1, 1]} : vector<1x128xf32> to vector<1x32xf32>
    %11 = vector.extract_strided_slice %9 {offsets = [0, 0], sizes = [1, 32], strides = [1, 1]} : vector<1x128xf32> to vector<1x32xf32>
    %12 = arith.addf %10, %11 : vector<1x32xf32>
    %13 = arith.negf %12 : vector<1x32xf32>
    %14 = math.exp %13 : vector<1x32xf32>
    %cst_12 = arith.constant 1.000000e+00 : f32
    %15 = vector.broadcast %cst_12 : f32 to vector<1x32xf32>
    %16 = arith.addf %15, %14 : vector<1x32xf32>
    %17 = arith.divf %15, %16 : vector<1x32xf32>
    %18 = vector.extract_strided_slice %6 {offsets = [0, 32], sizes = [1, 32], strides = [1, 1]} : vector<1x128xf32> to vector<1x32xf32>
    %19 = vector.extract_strided_slice %9 {offsets = [0, 32], sizes = [1, 32], strides = [1, 1]} : vector<1x128xf32> to vector<1x32xf32>
    %20 = arith.addf %18, %19 : vector<1x32xf32>
    %21 = arith.negf %20 : vector<1x32xf32>
    %22 = math.exp %21 : vector<1x32xf32>
    %cst_13 = arith.constant 1.000000e+00 : f32
    %23 = vector.broadcast %cst_13 : f32 to vector<1x32xf32>
    %24 = arith.addf %23, %22 : vector<1x32xf32>
    %25 = arith.divf %23, %24 : vector<1x32xf32>
    %26 = vector.extract_strided_slice %6 {offsets = [0, 64], sizes = [1, 32], strides = [1, 1]} : vector<1x128xf32> to vector<1x32xf32>
    %27 = vector.extract_strided_slice %9 {offsets = [0, 64], sizes = [1, 32], strides = [1, 1]} : vector<1x128xf32> to vector<1x32xf32>
    %28 = arith.mulf %17, %27 : vector<1x32xf32>
    %29 = arith.addf %26, %28 : vector<1x32xf32>
    %30 = math.tanh %29 : vector<1x32xf32>
    %cst_14 = arith.constant 1.000000e+00 : f32
    %31 = vector.broadcast %cst_14 : f32 to vector<1x32xf32>
    %32 = arith.subf %31, %25 : vector<1x32xf32>
    %33 = arith.mulf %32, %30 : vector<1x32xf32>
    %34 = arith.mulf %25, %7 : vector<1x32xf32>
    %35 = arith.addf %33, %34 : vector<1x32xf32>
    %c0_15 = arith.constant 0 : index
    %c0_16 = arith.constant 0 : index
    %36 = vector.load %arg7[%c0_15, %c0_16] : memref<1x32xf32, #tpu.memory_space<vmem>>, vector<1x32xf32>
    tpu.vector_store %arg7[%c0_15, %c0_16], %35 {strides = array<i32>} : memref<1x32xf32, #tpu.memory_space<vmem>>, vector<1x32xf32>,
    %c0_17 = arith.constant 0 : index
    %c0_18 = arith.constant 0 : index
    %37 = vector.load %arg8[%c0_17, %c0_18] : memref<1x32xf32, #tpu.memory_space<vmem>>, vector<1x32xf32>
    tpu.vector_store %arg8[%c0_17, %c0_18], %35 {strides = array<i32>} : memref<1x32xf32, #tpu.memory_space<vmem>>, vector<1x32xf32>,
    return
  }
  func.func @transform_0(%arg0: i32) -> (i32, i32) {
    %c0_i32 = arith.constant 0 : i32
    %c0_i32_0 = arith.constant 0 : i32
    %c0_i32_1 = arith.constant 0 : i32
    return %c0_i32, %c0_i32_0 : i32, i32
  }
  func.func @transform_1(%arg0: i32) -> (i32, i32) {
    %c0_i32 = arith.constant 0 : i32
    %c0_i32_0 = arith.constant 0 : i32
    %c0_i32_1 = arith.constant 0 : i32
    return %c0_i32, %c0_i32_0 : i32, i32
  }
  func.func @transform_2(%arg0: i32) -> (i32, i32) {
    %c0_i32 = arith.constant 0 : i32
    %c0_i32_0 = arith.constant 0 : i32
    %c0_i32_1 = arith.constant 0 : i32
    return %c0_i32, %c0_i32_0 : i32, i32
  }
  func.func @transform_3(%arg0: i32) -> (i32, i32) {
    %c0_i32 = arith.constant 0 : i32
    %c0_i32_0 = arith.constant 0 : i32
    %c0_i32_1 = arith.constant 0 : i32
    return %c0_i32, %c0_i32_0 : i32, i32
  }
  func.func @transform_4(%arg0: i32) -> (i32, i32) {
    %c0_i32 = arith.constant 0 : i32
    %c0_i32_0 = arith.constant 0 : i32
    %c0_i32_1 = arith.constant 0 : i32
    return %c0_i32, %c0_i32_0 : i32, i32
  }
  func.func @transform_5(%arg0: i32) -> (i32, i32) {
    %c0_i32 = arith.constant 0 : i32
    %c0_i32_0 = arith.constant 0 : i32
    %c0_i32_1 = arith.constant 0 : i32
    return %c0_i32, %c0_i32_0 : i32, i32
  }
  func.func @transform_6(%arg0: i32) -> (i32, i32) {
    %c0_i32 = arith.constant 0 : i32
    %c0_i32_0 = arith.constant 0 : i32
    %c0_i32_1 = arith.constant 0 : i32
    return %c0_i32, %c0_i32_0 : i32, i32
  }
  func.func @transform_7(%arg0: i32) -> (i32, i32) {
    %c0_i32 = arith.constant 0 : i32
    %c0_i32_0 = arith.constant 0 : i32
    %c0_i32_1 = arith.constant 0 : i32
    return %c0_i32, %c0_i32_0 : i32, i32
  }
}

</mosaic_0001>

<bundles_post_ra>
// kernel: encoder_rnn_forward.1
= control target key start
LH: loop header
LB: loop body
LE: loop exit
PB: predicated region body
PF: predicated region fallthrough
CT: control target
= control target key end

     0   :  { %13 = vsyncpa [#allocation3], 0  ;;  %s565_s0 = inlined_call_operand.vmem [shape: f32[1,32], index: 0, kind: input, shape index: {}]   ;;  %s566_s1 = inlined_call_operand.vmem [shape: f32[1,32], index: 1, kind: input, shape index: {}]   ;;  %s567_s2 = inlined_call_operand.hbm [shape: f32[32,128], index: 2, kind: input, shape index: {}]   ;;  %s568_s3 = inlined_call_operand.hbm [shape: f32[32,128], index: 3, kind: input, shape index: {}]   ;;  %s569_s4 = inlined_call_operand.vmem [shape: f32[1,128], index: 4, kind: input, shape index: {}]   ;;  %s570_s5 = inlined_call_operand.vmem [shape: f32[1,128], index: 5, kind: input, shape index: {}]   ;;  %s571_s6 = inlined_call_operand.hbm [shape: f32[1,32], index: 6, kind: output, shape index: {0}]   ;;  %s572_s7 = inlined_call_operand.hbm [shape: f32[1,32], index: 7, kind: output, shape index: {1}]  }
   0x1   :  { %14 = vsyncpa [#allocation6], 0 }
   0x2   :  { %15 = vsyncpa [#allocation4], 0 }
   0x3   :  { %16 = vsyncpa [#allocation9], 0  ;;  %s445_s24 = smov [#allocation2]   ;;  %s349_s28 = scalar_lea.hbm %s567_s2, 512 }
   0x4   :  { %s26_s25 = sshll.u32 %s445_s24, 4  ;;  %p350_p0 = scmp.ne.s32.totalorder %s567_s2, %s349_s28  ;;  %s27_s25 = int_to_ptr.vmem [resolvable:$true] %s26_s25 }
   0x5   :  { %p353_p1 = scmp.lt.u32.totalorder %s349_s28, %s567_s2 }
   0x7   :  { %p355_p2 = pnand %p353_p1, %p350_p0 }
   0x9   :  { %358 = shalt.err (!%p355_p2)
}
   0xa   :  { %s359_s10 = scalar_lea.vmem %s27_s25, 512  ;;  %p364_p4 = scmp.lt.s32.totalorder %s27_s25, %s27_s25 }
   0xb   :  { %p360_p3 = scmp.ne.s32.totalorder %s27_s25, %s359_s10  ;;  %p365_p5 = scmp.lt.s32.totalorder %s359_s10, %s359_s10 }
   0xd   :  { %p366_p6 = por %p365_p5, %p364_p4 }
   0xf   :  { %p367_p7 = pnand %p366_p6, %p360_p3 }
  0x11   :  { %370 = shalt.err (!%p367_p7)
}
  0x12   :  { %s446_s11 = smov 128   ;;  %s447_s12 = smov 8  }
  0x13   :  { %32 = dma.hbm_to_vmem [thread:$0]  %s567_s2, 512, %s27_s25, [#allocation3], %s446_s11, %s446_s11, %s447_s12  }
  0x14   :  { %s448_s15 = smov [#allocation5]   ;;  %s371_s19 = scalar_lea.hbm %s568_s3, 512 }
  0x15   :  { %s38_s16 = sshll.u32 %s448_s15, 4  ;;  %p372_p8 = scmp.ne.s32.totalorder %s568_s3, %s371_s19  ;;  %s39_s16 = int_to_ptr.vmem [resolvable:$true] %s38_s16 }
  0x16   :  { %p375_p9 = scmp.lt.u32.totalorder %s371_s19, %s568_s3 }
  0x18   :  { %p377_p10 = pnand %p375_p9, %p372_p8 }
  0x1a   :  { %380 = shalt.err (!%p377_p10)
}
  0x1b   :  { %s381_s24 = scalar_lea.vmem %s39_s16, 512  ;;  %p386_p12 = scmp.lt.s32.totalorder %s39_s16, %s39_s16 }
  0x1c   :  { %p382_p11 = scmp.ne.s32.totalorder %s39_s16, %s381_s24  ;;  %p387_p13 = scmp.lt.s32.totalorder %s381_s24, %s381_s24 }
  0x1e   :  { %p388_p0 = por %p387_p13, %p386_p12 }
  0x20   :  { %p389_p1 = pnand %p388_p0, %p382_p11 }
  0x22   :  { %392 = shalt.err (!%p389_p1)
}
  0x23   :  { %44 = dma.hbm_to_vmem [thread:$0]  %s568_s3, 512, %s39_s16, [#allocation6], %s446_s11, %s446_s11, %s447_s12  }
  0x24   :  { %437 = dma.done.wait [#allocation3], 512  }
  0x25   :  { %438 = vsyncadd [#allocation3], 4294966784 }
  0x26   :  { %439 = dma.done.wait [#allocation6], 512  }
  0x27   :  { %440 = vsyncadd [#allocation6], 4294966784  ;;  %v449_v0 = vmov 0.0|0.0   ;;  %vm450_vm0 = vmmov 0   ;;  %v451_v1 = vmov 0.0   ;;  %v55_v2 = vld [vmem:[#allocation2] sm:$0xff]  ;;  %v238_v33 = vlaneseq }
  0x28   :  { %319 = vmatprep.subr.bf16.mxu0 %v449_v0  ;;  %325 = vmatprep.subr.bf16.mxu1 %v449_v0  ;;  %v56_v3 = vld [vmem:[#allocation2 + $0x8] sm:$0xff]  ;;  %v59_v4 = vld [vmem:[#allocation5] sm:$0xff]  ;;  %v57_v7 = vld [vmem:[#allocation2 + $0x10] sm:$0xff]  ;;  %vm66_vm1 = vcmask 261120   ;;  %s452_s8 = smov 64   ;;  %s456_s11 = smov [#allocation8]  }
  0x29   :  { %305 = vmatprep.mubr.msk.f32.mxu0 %vm450_vm0, %v451_v1  ;;  %316 = vmatprep.mubr.msk.f32.mxu1 %vm450_vm0, %v451_v1  ;;  %v320_v5 = vpack.c.bf16 %v56_v3, %v55_v2  ;;  %v60_v6 = vld [vmem:[#allocation5 + $0x8] sm:$0xff]  ;;  %v58_v8 = vld [vmem:[#allocation2 + $0x18] sm:$0xff]  ;;  %v61_v10 = vld [vmem:[#allocation5 + $0x10] sm:$0xff]  ;;  %v239_v34 = vshrl.u32 %v238_v33, 7  ;;  %s270_s12 = sshll.u32 %s456_s11, 4  ;;  %vm251_vm2 = vcmask 253952   ;;  %s533_s12 = int_to_ptr.vmem [resolvable:$true] %s270_s12 }
  0x2a   :  { %v326_v9 = vpack.c.bf16 %v60_v6, %v59_v4  ;;  %v62_v11 = vld [vmem:[#allocation5 + $0x18] sm:$0xff]  ;;  %v323_v12 = vpack.c.bf16 %v58_v8, %v57_v7  ;;  %v64_v14 = vld [vmem:[%s565_s0] sm:$0x1] }
  0x2b   :  { %321 = vmatpush3.bf16.msra.mxu0 %v320_v5  ;;  %v329_v13 = vpack.c.bf16 %v62_v11, %v61_v10  ;;  %v140_v15 = vld [vmem:[%s566_s1] sm:$0x1]  ;;  %v240_v35 = vsub.s32 0, %v239_v34  ;;  %s453_s1 = smov 96  }
  0x2c   :  { %327 = vmatpush3.bf16.msra.mxu1 %v326_v9  ;;  %322 = vmatprep.subr.bf16.mxu0 %v449_v0  ;;  %v63_v16 = vld [vmem:[%s570_s5] sm:$0x1]  ;;  %s455_s5 = smov [#allocation7]  }
  0x2d   :  { %328 = vmatprep.subr.bf16.mxu1 %v449_v0  ;;  %v65_v22 = vld [vmem:[%s569_s4] sm:$0x1]  ;;  %v241_v37 = vrot.slane %v140_v15, %v240_v35  ;;  %s454_s4 = smov 32   ;;  %s260_s10 = sshll.u32 %s455_s5, 4  ;;  %s261_s10 = int_to_ptr.vmem [resolvable:$true] %s260_s10 }
  0x2e   :  { %s393_s13 = scalar_lea.vmem %s261_s10, 16  ;;  %s397_s14 = scalar_lea.vmem %s261_s10, 32 }
  0x2f   :  { %324 = vmatpush3.bf16.msra.mxu0 %v323_v12  ;;  %p394_p2 = scmp.ne.s32.totalorder %s261_s10, %s393_s13  ;;  %p398_p3 = scmp.lt.s32.totalorder %s261_s10, %s261_s10 }
  0x30   :  { %330 = vmatpush3.bf16.msra.mxu1 %v329_v13  ;;  %p399_p4 = scmp.lt.s32.totalorder %s397_s14, %s393_s13 }
  0x32   :  { %306 = vmatmul.mubr.msk.f32.vlgmr.msra.gmra.mrb[0].mxu0 %vm66_vm1, %v64_v14  ;;  %p400_p5 = por %p399_p4, %p398_p3 }
  0x33   :  { %317 = vmatmul.mubr.msk.f32.vlgmr.msra.gmra.mrb[0].mxu1 %vm66_vm1, %v140_v15 }
  0x34   :  { %p401_p6 = pnand %p400_p5, %p394_p2 }
 0x105   :  { %v136_v17 = vpop.f32.mrb[0].mxu0 }
 0x106   :  { %v210_v18 = vpop.f32.mrb[0].mxu1  ;;  %v307_v19 = vpop.f32.mrb[1].mxu0  ;;  %v137_v23 = vadd.f32 %v136_v17, %v65_v22 }
 0x107   :  { %v211_v20 = vadd.f32 %v210_v18, %v63_v16  ;;  %v318_v21 = vpop.f32.mrb[1].mxu1 }
 0x109   :  { %222 = vrot.lane.b32.xlu0 %v211_v20, %s452_s8  ;;  %v214_v24 = vadd.f32 %v211_v20, %v137_v23 }
 0x10b   :  { %v286_v25 = vmul.f32 -1.442695, %v214_v24 }
 0x10d   :  { %343 = vpow2.f32 %v286_v25 }
 0x117   :  { %v344_v26 = vpop.eup %343 }
 0x118   :  { %v218_v27 = vadd.f32 1.0, %v344_v26 }
 0x11a   :  { %345 = vrcp.f32 %v218_v27 }
 0x124   :  { %v346_v28 = vpop.eup %345 }
 0x125   :  { %v232_v39 = vsub.f32 1.0, %v346_v28 }
 0x17b   :  { %v223_v29 = vpop.permute.xlu0 %222 }
 0x17c   :  { %v225_v30 = vmul.f32 %v346_v28, %v223_v29 }
 0x17e   :  { %227 = vrot.lane.b32.xlu0 %v225_v30, %s452_s8 }
 0x1f0   :  { %v228_v31 = vpop.permute.xlu0 %227 }
 0x1f1   :  { %v230_v32 = vadd.f32 %v228_v31, %v137_v23 }
 0x1f3   :  { %347 = vtanh.f32 %v230_v32 }
 0x1fd   :  { %v348_v36 = vpop.eup %347 }
 0x1fe   :  { %234 = vrot.lane.b32.xlu1 %v348_v36, %s453_s1 }
 0x202   :  { %242 = vrot.lane.b32.xlu1 %v241_v37, %s454_s4 }
 0x270   :  { %v235_v38 = vpop.permute.xlu1 %234 }
 0x271   :  { %v237_v41 = vmul.f32 %v235_v38, %v232_v39 }
 0x274   :  { %v243_v40 = vpop.permute.xlu1 %242 }
 0x275   :  { %v245_v42 = vmul.f32 %v346_v28, %v243_v40 }
 0x277   :  { %v246_v43 = vadd.f32 %v245_v42, %v237_v41 }
 0x279   :  { %248 = vrot.lane.b32.xlu0 %v246_v43, %s453_s1 }
 0x2eb   :  { %v249_v44 = vpop.permute.xlu0 %248 }
 0x2ec   :  { %252 = vst.msk [vmem:[#allocation7] sm:$0x1] %vm251_vm2, %v249_v44  ;;  %253 = vst.msk [vmem:[#allocation8] sm:$0x1] %vm251_vm2, %v249_v44 }
 0x2ed   :  { %404 = shalt.err (!%p401_p6)
}
 0x2ee   :  { %s405_s17 = scalar_lea.hbm %s571_s6, 16 }
 0x2ef   :  { %p406_p7 = scmp.ne.s32.totalorder %s571_s6, %s405_s17  ;;  %p409_p8 = scmp.lt.u32.totalorder %s405_s17, %s571_s6 }
 0x2f1   :  { %p411_p9 = pnand %p409_p8, %p406_p7 }
 0x2f3   :  { %414 = shalt.err (!%p411_p9)
}
 0x2f4   :  { %263 = dma.vmem_to_hbm [thread:$0]  %s261_s10, 16, %s571_s6, [#allocation4]  }
 0x2f5   :  { %s415_s24 = scalar_lea.vmem %s533_s12, 16  ;;  %s419_s2 = scalar_lea.vmem %s533_s12, 32 }
 0x2f6   :  { %p416_p10 = scmp.ne.s32.totalorder %s533_s12, %s415_s24  ;;  %p420_p11 = scmp.lt.s32.totalorder %s533_s12, %s533_s12 }
 0x2f7   :  { %p421_p12 = scmp.lt.s32.totalorder %s419_s2, %s415_s24 }
 0x2f9   :  { %p422_p13 = por %p421_p12, %p420_p11 }
 0x2fb   :  { %p423_p0 = pnand %p422_p13, %p416_p10 }
 0x2fd   :  { %426 = shalt.err (!%p423_p0)
}
 0x2fe   :  { %s427_s26 = scalar_lea.hbm %s572_s7, 16 }
 0x2ff   :  { %p428_p1 = scmp.ne.s32.totalorder %s572_s7, %s427_s26  ;;  %p431_p2 = scmp.lt.u32.totalorder %s427_s26, %s572_s7 }
 0x301   :  { %p433_p3 = pnand %p431_p2, %p428_p1 }
 0x303   :  { %436 = shalt.err (!%p433_p3)
}
 0x304   :  { %273 = dma.vmem_to_hbm [thread:$0]  %s533_s12, 16, %s572_s7, [#allocation9]  }
 0x305   :  { %441 = dma.done.wait [#allocation4], 16  }
 0x306   :  { %442 = vsyncadd [#allocation4], 4294967280 }
 0x307   :  { %443 = dma.done.wait [#allocation9], 16  }
 0x308   :  { %444 = vsyncadd [#allocation9], 4294967280 }
 0x309   :  { %280 = vsyncpa [#allocation3], 1 }
 0x30a   :  { %281 = vsyncpa [#allocation6], 1 }
 0x30b   :  { %282 = vsyncpa [#allocation4], 1 }
 0x30c   :  { %283 = vsyncpa [#allocation9], 1 }

</bundles_post_ra>
